<compile_context>
chip_gen: v6e
topology: v6e:2x2x1
jax: 0.10.0
libtpu: 0.0.40
codegen_flags: <defaults>
</compile_context>

<pallas_src>
import functools

import jax
import jax.numpy as jnp
from jax import lax
from jax.experimental import pallas as pl
from jax.experimental.pallas import tpu as pltpu

_LANE = 128
_SUBLANE = 8
_NAB_W = 384          # 3 * 128: lane-dense row width for the flat xyz stream


def _round_up(n, m):
    return ((n + m - 1) // m) * m


def _to_lane_dense(x_flat, pad_value):
    """Pad a small flat vector and reshape to an f32 (rows, 128) slab, rows % 8 == 0."""
    x_flat = x_flat.astype(jnp.float32)
    n = x_flat.shape[0]
    n_pad = _round_up(max(n, 1), _LANE * _SUBLANE)
    x = jnp.pad(x_flat, (0, n_pad - n), constant_values=pad_value)
    return x.reshape(n_pad // _LANE, _LANE)


# -----------------------------------------------------------------------------
# Main trainer-loss kernel (img L1 + eikonal + mask BCE + psnr + density L1).
# Grid: one "parallel" axis over nablas tiles.  Each step writes an (8, 128)
# lane-dense partial-sum block; block 0 additionally reduces the (small,
# VMEM-resident) ray-level tensors.
# -----------------------------------------------------------------------------
def _trainer_loss_kernel(nab_ref,    # VMEM (tile_rows, 384)  native-dtype xyz-interleaved
                         sel_ref,    # VMEM (384, 128)        constant xyz->point selector
                         rgb_ref,    # VMEM (r3rows, 128)
                         tgt_ref,    # VMEM (r3rows, 128)
                         tm3_ref,    # VMEM (r3rows, 128)     (mask & ignore) per channel
                         mvol_ref,   # VMEM (rrows, 128)
                         mask_ref,   # VMEM (rrows, 128)
                         dp_ref,     # VMEM (drows, 128)
                         dg_ref,     # VMEM (drows, 128)
                         out_ref,    # VMEM (8, 128) partial sums of this block
                         *, density_clip, tile_rows, grid_n, n_pts, n_rays,
                         mask_last):
    i = pl.program_id(0)

    # ---- eikonal partial over this nablas tile (every grid step) -----------
    def eik_partial(apply_tail_mask):
        x = nab_ref[...].astype(jnp.float32)     # bf16 inputs widen here (VPU)
        sq = x * x
        # Per-point sum of squares on the (otherwise idle) MXU: sel is a
        # constant one-hot selector mapping interleaved xyz lanes -> point lane.
        ssum = jnp.dot(sq, sel_ref[...], preferred_element_type=jnp.float32)
        # sqrt as s * rsqrt(s): single EUP op per point.
        nn = ssum * lax.rsqrt(jnp.maximum(ssum, 1e-30))
        d = nn - 1.0
        dd = d * d
        if apply_tail_mask:
            # Only the last grid block can contain OOB rows / padded points;
            # mask them against the true point count (static).
            prow = lax.broadcasted_iota(jnp.int32, dd.shape, 0) + i * tile_rows
            pcol = lax.broadcasted_iota(jnp.int32, dd.shape, 1)
            full_rows = n_pts // _LANE
            rem = n_pts % _LANE
            pmask = (prow < full_rows) | ((prow == full_rows) & (pcol < rem))
            dd = jnp.where(pmask, dd, 0.0)       # also kills NaN/Inf garbage
        return jnp.sum(dd)

    if mask_last:
        last = grid_n - 1

        @pl.when(i == last)
        def _():
            out_ref[0:1, :] = jnp.full((1, _LANE), eik_partial(True), jnp.float32)

        @pl.when(i != last)
        def _():
            out_ref[0:1, :] = jnp.full((1, _LANE), eik_partial(False), jnp.float32)
    else:
        out_ref[0:1, :] = jnp.full((1, _LANE), eik_partial(False), jnp.float32)

    out_ref[1:8, :] = jnp.zeros((7, _LANE), jnp.float32)

    # ---- ray-level + density terms: small, reduced once on block 0 ---------
    @pl.when(i == 0)
    def _():
        diff = rgb_ref[...] - tgt_ref[...]
        tm3 = tm3_ref[...]
        l1_num = jnp.sum(jnp.abs(diff) * tm3)
        sq_num = jnp.sum(diff * diff * tm3)
        tm3_sum = jnp.sum(tm3)

        mvol = jnp.clip(mvol_ref[...], 0.001, 1.0 - 0.001)   # mask_volume_clipped
        m = mask_ref[...]
        # valid-ray mask generated in-kernel (no HBM input / DMA needed)
        ridx = (lax.broadcasted_iota(jnp.int32, m.shape, 0) * _LANE
                + lax.broadcasted_iota(jnp.int32, m.shape, 1))
        valid = (ridx < n_rays).astype(jnp.float32)
        bce = -(m * jnp.log(mvol) + (1.0 - m) * jnp.log(1.0 - mvol))
        bce_sum = jnp.sum(bce * valid)

        dg = dg_ref[...]
        dp = dp_ref[...]
        dmask = (jnp.abs(dg) <= density_clip).astype(jnp.float32)  # padding excluded
        dl1_sum = jnp.sum(jnp.abs(dg - dp) * dmask)
        dcnt = jnp.sum(dmask)

        out_ref[1:2, :] = jnp.full((1, _LANE), l1_num, jnp.float32)
        out_ref[2:3, :] = jnp.full((1, _LANE), sq_num, jnp.float32)
        out_ref[3:4, :] = jnp.full((1, _LANE), tm3_sum, jnp.float32)
        out_ref[4:5, :] = jnp.full((1, _LANE), bce_sum, jnp.float32)
        out_ref[5:6, :] = jnp.full((1, _LANE), dl1_sum, jnp.float32)
        out_ref[6:7, :] = jnp.full((1, _LANE), dcnt, jnp.float32)


@functools.partial(jax.jit, static_argnames=("density_clip", "tile_rows"))
def trainer_compute_loss(rgb, target_rgb, mask_volume, mask, mask_ignore,
                         nablas, density_pred, density_gt, loss_weights,
                         density_clip=0.1, tile_rows=2048):
    """rgb/target_rgb: (B,N,3); mask_*: (B,N); nablas: (B,N,P,3) f32 or bf16;
    density_*: any shape; loss_weights: (3,) = [img, eikonal, mask].

    tile_rows: rows of 384 flat nabla elements per grid step (f32: ~1.5 KiB
    per row).  2048 (~3 MiB/tile) suits v5e/v6e; raise to 4096-8192 on v7x to
    amortize per-step overhead (stay within its 64 MiB VMEM / scoped limit)."""
    B, N = rgb.shape[0], rgb.shape[1]
    R = B * N
    n_pts = int(nablas.size) // 3
    total = n_pts * 3

    # --- nablas: lane-dense (rows, 384) *view* of the native-dtype buffer.
    # No dtype cast, and (when n_pts % 128 == 0) no copy: this is the dominant
    # HBM stream and must not be materialized twice.
    nab_flat = nablas.reshape(-1)
    if total % _NAB_W != 0:
        # Ragged tail: one zero-pad (a copy; keep N_rays*N_pts % 128 == 0
        # upstream to stay on the zero-copy path).  Padded points are masked
        # in-kernel against n_pts.
        nab_flat = jnp.pad(nab_flat, (0, _NAB_W - total % _NAB_W))
    rows_array = nab_flat.shape[0] // _NAB_W
    nab2 = nab_flat.reshape(rows_array, _NAB_W)

    itemsize = jnp.dtype(nablas.dtype).itemsize
    row_align = _SUBLANE * max(1, 4 // max(1, itemsize))   # 8 for f32, 16 for bf16
    tr = max(row_align, (int(tile_rows) // row_align) * row_align)
    tr = min(tr, _round_up(rows_array, row_align))
    grid_n = -(-rows_array // tr)
    mask_last = (rows_array % tr != 0) or (n_pts % _LANE != 0)

    # constant xyz->point selector for the in-kernel MXU channel reduce
    sel = (jnp.arange(_NAB_W, dtype=jnp.int32)[:, None] // 3
           == jnp.arange(_LANE, dtype=jnp.int32)[None, :]).astype(jnp.float32)

    # --- ray-level tensors: tiny lane-dense slabs ----------------------------
    tm = mask.astype(jnp.float32) * mask_ignore.astype(jnp.float32)      # (B,N)
    tm3 = jnp.broadcast_to(tm[..., None], (B, N, 3)).reshape(-1)
    rgb_f = _to_lane_dense(rgb.reshape(-1), 0.0)
    tgt_f = _to_lane_dense(target_rgb.reshape(-1), 0.0)
    tm3_f = _to_lane_dense(tm3, 0.0)
    mvol_f = _to_lane_dense(mask_volume.reshape(-1), 0.5)
    mask_f = _to_lane_dense(mask.astype(jnp.float32).reshape(-1), 0.0)
    dp_f = _to_lane_dense(density_pred.reshape(-1), 0.0)
    dg_f = _to_lane_dense(density_gt.reshape(-1), float(density_clip) + 1.0)

    def const2d(shape):
        return pl.BlockSpec(shape, lambda i: (0, 0))

    slab_bytes = 4 * (sel.size + rgb_f.size + tgt_f.size + tm3_f.size
                      + mvol_f.size + mask_f.size + dp_f.size + dg_f.size)
    cost = pl.CostEstimate(
        flops=int(10 * total),
        transcendentals=int(n_pts + 2 * R),
        bytes_accessed=int(nab2.size * itemsize + slab_bytes
                           + grid_n * _SUBLANE * _LANE * 4))

    kern = functools.partial(
        _trainer_loss_kernel, density_clip=float(density_clip), tile_rows=tr,
        grid_n=grid_n, n_pts=n_pts, n_rays=R, mask_last=mask_last)

    partials = pl.pallas_call(
        kern,
        grid=(grid_n,),
        in_specs=[
            pl.BlockSpec((tr, _NAB_W), lambda i: (i, 0)),   # streamed nablas tiles
            const2d(sel.shape),
            const2d(rgb_f.shape), const2d(tgt_f.shape), const2d(tm3_f.shape),
            const2d(mvol_f.shape), const2d(mask_f.shape),
            const2d(dp_f.shape), const2d(dg_f.shape),
        ],
        out_specs=pl.BlockSpec((_SUBLANE, _LANE), lambda i: (i, 0)),
        out_shape=jax.ShapeDtypeStruct((grid_n * _SUBLANE, _LANE), jnp.float32),
        compiler_params=pltpu.CompilerParams(
            dimension_semantics=("parallel",)),
        cost_estimate=cost,
    )(nab2, sel, rgb_f, tgt_f, tm3_f, mvol_f, mask_f, dp_f, dg_f)

    # --- trivial JAX finish: combine per-block partial sums ------------------
    sums = jnp.sum(partials[:, 0].reshape(grid_n, _SUBLANE), axis=0)    # (8,)
    eik_sum, l1_num, sq_num = sums[0], sums[1], sums[2]
    tm3_sum, bce_sum, dl1_sum, dcnt = sums[3], sums[4], sums[5], sums[6]

    w = loss_weights.astype(jnp.float32)
    tm_sum = tm3_sum / 3.0
    loss_img = w[0] * l1_num / (tm_sum + 1e-10)
    loss_eik = w[1] * (eik_sum / n_pts)
    loss_mask = w[2] * (bce_sum / R)
    mse = sq_num / (3.0 * tm_sum + 1e-10)      # NOTE: -inf psnr if no valid rays (matches ref)
    psnr = -10.0 * jnp.log10(mse)
    total_loss = loss_img + loss_eik + loss_mask
    # TODO(synk): distill weighting of loss_density needs the teacher model.
    loss_density = jnp.where(dcnt > 0, dl1_sum / jnp.maximum(dcnt, 1.0), 0.0)

    return {
        "loss_img": loss_img,
        "loss_eikonal": loss_eik,
        "loss_mask": loss_mask,
        "loss_density": loss_density,
        "total": total_loss,
        "psnr": psnr,
    }


# -----------------------------------------------------------------------------
# Standalone DensityLoss module: mean of |gt - pred| where |gt| <= density_clip.
# Training should use the fused trainer kernel (it already produces dl1/dcnt);
# this path exists only for parity with the torch DensityLoss module.
# -----------------------------------------------------------------------------
def _density_loss_kernel(pred_ref, gt_ref, o_ref, *, density_clip):
    gt = gt_ref[...]
    pred = pred_ref[...]
    m = (jnp.abs(gt) <= density_clip).astype(jnp.float32)
    cnt = jnp.sum(m)
    num = jnp.sum(jnp.abs(gt - pred) * m)
    o_ref[0, 0] = jnp.where(cnt > 0, num / jnp.maximum(cnt, 1.0), 0.0)


@functools.partial(jax.jit, static_argnames=("density_clip",))
def density_loss(density_pred, density_gt, density_clip=0.1):
    # Inputs loaded whole into VMEM -- fine for per-ray densities; grid-tile
    # if density tensors ever get large.
    pred_f = _to_lane_dense(density_pred.reshape(-1), 0.0)
    gt_f = _to_lane_dense(density_gt.reshape(-1), float(density_clip) + 1.0)
    out = pl.pallas_call(
        functools.partial(_density_loss_kernel, density_clip=float(density_clip)),
        in_specs=[pl.BlockSpec(memory_space=pltpu.MemorySpace.VMEM),
                  pl.BlockSpec(memory_space=pltpu.MemorySpace.VMEM)],
        out_specs=pl.BlockSpec(memory_space=pltpu.MemorySpace.SMEM),
        out_shape=jax.ShapeDtypeStruct((1, 1), jnp.float32),
    )(pred_f, gt_f)
    return out[0, 0]


# -----------------------------------------------------------------------------
# Pure-JAX reference (mirrors the PyTorch semantics) for a correctness check.
# -----------------------------------------------------------------------------
def _ref_losses(rgb, tgt, mvol, mask, mign, nablas, dpred, dgt, w, density_clip):
    w_img, w_eik, w_msk = w[0], w[1], w[2]
    mvol_c = jnp.clip(mvol, 0.001, 1.0 - 0.001)
    maskf = mask.astype(jnp.float32)
    tm = maskf * mign.astype(jnp.float32)
    bce = -(maskf * jnp.log(mvol_c) + (1.0 - maskf) * jnp.log(1.0 - mvol_c))
    loss_mask = w_msk * jnp.mean(bce)
    l1 = w_img * jnp.abs(rgb - tgt)
    loss_img = jnp.sum(l1 * tm[..., None]) / (jnp.sum(tm) + 1e-10)
    nn = jnp.linalg.norm(nablas.astype(jnp.float32), axis=-1)
    loss_eik = w_eik * jnp.mean((nn - 1.0) ** 2)
    mse = jnp.sum(((rgb - tgt) ** 2) * tm[..., None]) / (3.0 * jnp.sum(tm) + 1e-10)
    psnr = -10.0 * jnp.log10(mse)
    dm = (jnp.abs(dgt) <= density_clip).astype(jnp.float32)
    dloss = jnp.sum(jnp.abs(dgt - dpred) * dm) / jnp.sum(dm)
    return {
        "loss_img": loss_img,
        "loss_eikonal": loss_eik,
        "loss_mask": loss_mask,
        "loss_density": dloss,
        "total": loss_img + loss_eik + loss_mask,
        "psnr": psnr,
    }


# -----------------------------------------------------------------------------
if __name__ == "__main__":
    key = jax.random.PRNGKey(0)

    def make_inputs(B, N_rays, N_pts, seed_key):
        kr, kt, kv, km, ki, kn, kp, kg = jax.random.split(seed_key, 8)
        rgb = jax.random.uniform(kr, (B, N_rays, 3), jnp.float32)
        target_rgb = jax.random.uniform(kt, (B, N_rays, 3), jnp.float32)
        mask_volume = jax.random.uniform(kv, (B, N_rays), jnp.float32)
        mask = jax.random.uniform(km, (B, N_rays), jnp.float32) > 0.3
        mask_ignore = jax.random.uniform(ki, (B, N_rays), jnp.float32) > 0.1
        nablas = jax.random.normal(kn, (B, N_rays, N_pts, 3), jnp.float32)
        density_pred = jax.random.normal(kp, (B, N_rays, 1), jnp.float32) * 0.2
        density_gt = jax.random.normal(kg, (B, N_rays, 1), jnp.float32) * 0.2
        return (rgb, target_rgb, mask_volume, mask, mask_ignore, nablas,
                density_pred, density_gt)

    loss_weights = jnp.array([1.0, 0.1, 0.5], dtype=jnp.float32)  # img, eikonal, mask
    keys = jax.random.split(key, 3)
    names = ("loss_img", "loss_eikonal", "loss_mask", "loss_density",
             "total", "psnr")

    def check(inputs, tile_rows, tag, nablas_ref=None):
        out = trainer_compute_loss(*inputs, loss_weights,
                                   density_clip=0.1, tile_rows=tile_rows)
        jax.block_until_ready(out)
        nab_r = inputs[5] if nablas_ref is None else nablas_ref
        ref = _ref_losses(inputs[0], inputs[1], inputs[2], inputs[3], inputs[4],
                          nab_r, inputs[6], inputs[7], loss_weights, 0.1)
        for k in names:
            assert jnp.allclose(out[k], ref[k], rtol=1e-3, atol=1e-5), \
                (tag, k, out[k], ref[k])
        return out

    # 1) zero-copy fast path (n_pts % 128 == 0) with a partial last grid block
    #    (small tile_rows so the multi-block "parallel" grid path is exercised)
    in1 = make_inputs(2, 128, 36, keys[0])
    check(in1, tile_rows=16, tag="divisible")

    # 2) ragged tail (n_pts % 128 != 0): wrapper pads to one full row, kernel
    #    masks the padded points and the OOB rows of the last block.
    in2 = make_inputs(2, 100, 33, keys[1])
    check(in2, tile_rows=16, tag="ragged")

    # 3) native bf16 nablas streaming (no wrapper upcast; widened in-kernel)
    in3 = list(make_inputs(2, 128, 36, keys[2]))
    in3[5] = in3[5].astype(jnp.bfloat16)
    check(tuple(in3), tile_rows=16, tag="bf16",
          nablas_ref=in3[5].astype(jnp.float32))

    # standalone DensityLoss parity check
    dloss = density_loss(in1[6], in1[7], density_clip=0.1)
    jax.block_until_ready(dloss)
    ref_d = _ref_losses(*in1, loss_weights, 0.1)["loss_density"]
    assert jnp.allclose(dloss, ref_d, rtol=1e-3, atol=1e-5), (dloss, ref_d)

    print("KERNEL_OK")
</pallas_src>

<mosaic_0001>
module attributes {stable_mosaic.version = 11 : i64} {
  func.func @_trainer_loss_kernel(%arg0: i32, %arg1: memref<16x384xf32, #tpu.memory_space<vmem>>, %arg2: memref<384x128xf32, #tpu.memory_space<vmem>>, %arg3: memref<8x128xf32, #tpu.memory_space<vmem>>, %arg4: memref<8x128xf32, #tpu.memory_space<vmem>>, %arg5: memref<8x128xf32, #tpu.memory_space<vmem>>, %arg6: memref<8x128xf32, #tpu.memory_space<vmem>>, %arg7: memref<8x128xf32, #tpu.memory_space<vmem>>, %arg8: memref<8x128xf32, #tpu.memory_space<vmem>>, %arg9: memref<8x128xf32, #tpu.memory_space<vmem>>, %arg10: memref<8x128xf32, #tpu.memory_space<vmem>>) attributes {dimension_semantics = [#tpu.dimension_semantics<parallel>], iteration_bounds = array<i64: 5>, scalar_prefetch = 0 : i64, scratch_operands = 0 : i64, tpu.core_type = #tpu.core_type<tc>, window_params = [{transform_indices = @transform_0, window_bounds = array<i64: 16, 384>}, {pipeline_mode = #tpu.pipeline_mode<synchronous>, transform_indices = @transform_1, window_bounds = array<i64: 384, 128>}, {pipeline_mode = #tpu.pipeline_mode<synchronous>, transform_indices = @transform_2, window_bounds = array<i64: 8, 128>}, {pipeline_mode = #tpu.pipeline_mode<synchronous>, transform_indices = @transform_3, window_bounds = array<i64: 8, 128>}, {pipeline_mode = #tpu.pipeline_mode<synchronous>, transform_indices = @transform_4, window_bounds = array<i64: 8, 128>}, {pipeline_mode = #tpu.pipeline_mode<synchronous>, transform_indices = @transform_5, window_bounds = array<i64: 8, 128>}, {pipeline_mode = #tpu.pipeline_mode<synchronous>, transform_indices = @transform_6, window_bounds = array<i64: 8, 128>}, {pipeline_mode = #tpu.pipeline_mode<synchronous>, transform_indices = @transform_7, window_bounds = array<i64: 8, 128>}, {pipeline_mode = #tpu.pipeline_mode<synchronous>, transform_indices = @transform_8, window_bounds = array<i64: 8, 128>}, {transform_indices = @transform_9, window_bounds = array<i64: 8, 128>}]} {
    %c4_i32 = arith.constant 4 : i32
    %0 = arith.cmpi eq, %arg0, %c4_i32 : i32
    %1 = arith.extui %0 : i1 to i32
    %c0_i32 = arith.constant 0 : i32
    %2 = arith.cmpi ne, %1, %c0_i32 : i32
    scf.if %2 {
      %c0_4 = arith.constant 0 : index
      %c0_5 = arith.constant 0 : index
      %11 = vector.load %arg1[%c0_4, %c0_5] : memref<16x384xf32, #tpu.memory_space<vmem>>, vector<16x384xf32>
      %12 = arith.mulf %11, %11 : vector<16x384xf32>
      %c0_6 = arith.constant 0 : index
      %c0_7 = arith.constant 0 : index
      %13 = vector.load %arg2[%c0_6, %c0_7] : memref<384x128xf32, #tpu.memory_space<vmem>>, vector<384x128xf32>
      %cst_8 = arith.constant dense<0.000000e+00> : vector<16x128xf32>
      %14 = tpu.matmul %12, %13, %cst_8 {dimension_numbers = #tpu.dot_dimension_numbers<[1], [0], [0], [1], [0, 0, 1, 1], [], []>} : vector<16x384xf32>, vector<384x128xf32>, vector<16x128xf32> -> vector<16x128xf32>
      %cst_9 = arith.constant 1.000000e-30 : f32
      %15 = vector.broadcast %cst_9 : f32 to vector<16x128xf32>
      %16 = arith.maximumf %14, %15 : vector<16x128xf32>
      %17 = math.rsqrt %16 : vector<16x128xf32>
      %18 = arith.mulf %14, %17 : vector<16x128xf32>
      %cst_10 = arith.constant 1.000000e+00 : f32
      %19 = vector.broadcast %cst_10 : f32 to vector<16x128xf32>
      %20 = arith.subf %18, %19 : vector<16x128xf32>
      %21 = arith.mulf %20, %20 : vector<16x128xf32>
      %22 = tpu.iota {dimensions = array<i32: 0>} : vector<16x128xi32>
      %c16_i32 = arith.constant 16 : i32
      %23 = arith.muli %arg0, %c16_i32 : i32
      %24 = vector.broadcast %23 : i32 to vector<16x128xi32>
      %25 = arith.addi %22, %24 : vector<16x128xi32>
      %26 = tpu.iota {dimensions = array<i32: 1>} : vector<16x128xi32>
      %c72_i32 = arith.constant 72 : i32
      %27 = vector.broadcast %c72_i32 : i32 to vector<16x128xi32>
      %28 = arith.cmpi slt, %25, %27 : vector<16x128xi32>
      %c72_i32_11 = arith.constant 72 : i32
      %29 = vector.broadcast %c72_i32_11 : i32 to vector<16x128xi32>
      %30 = arith.cmpi eq, %25, %29 : vector<16x128xi32>
      %c0_i32_12 = arith.constant 0 : i32
      %31 = vector.broadcast %c0_i32_12 : i32 to vector<16x128xi32>
      %32 = arith.cmpi slt, %26, %31 : vector<16x128xi32>
      %33 = arith.andi %30, %32 : vector<16x128xi1>
      %34 = arith.ori %28, %33 : vector<16x128xi1>
      %cst_13 = arith.constant 0.000000e+00 : f32
      %35 = vector.broadcast %cst_13 : f32 to vector<16x128xf32>
      %36 = arith.select %34, %21, %35 : vector<16x128xi1>, vector<16x128xf32>
      %37 = vector.shape_cast %36 : vector<16x128xf32> to vector<1x16x128xf32>
      %cst_14 = arith.constant dense<0.000000e+00> : vector<1xf32>
      %38 = vector.multi_reduction <add>, %37, %cst_14 [1, 2] : vector<1x16x128xf32> to vector<1xf32>
      %39 = vector.shape_cast %38 : vector<1xf32> to vector<1x1x1xf32>
      %40 = vector.extract %39[0, 0, 0] : f32 from vector<1x1x1xf32>
      %41 = vector.broadcast %40 : f32 to vector<1x128xf32>
      %c0_15 = arith.constant 0 : index
      %c0_16 = arith.constant 0 : index
      %42 = vector.load %arg10[%c0_15, %c0_16] : memref<8x128xf32, #tpu.memory_space<vmem>>, vector<1x128xf32>
      tpu.vector_store %arg10[%c0_15, %c0_16], %41 {strides = array<i32>} : memref<8x128xf32, #tpu.memory_space<vmem>>, vector<1x128xf32>,
    } else {
    }
    %c4_i32_0 = arith.constant 4 : i32
    %3 = arith.cmpi ne, %arg0, %c4_i32_0 : i32
    %4 = arith.extui %3 : i1 to i32
    %c0_i32_1 = arith.constant 0 : i32
    %5 = arith.cmpi ne, %4, %c0_i32_1 : i32
    scf.if %5 {
      %c0_4 = arith.constant 0 : index
      %c0_5 = arith.constant 0 : index
      %11 = vector.load %arg1[%c0_4, %c0_5] : memref<16x384xf32, #tpu.memory_space<vmem>>, vector<16x384xf32>
      %12 = arith.mulf %11, %11 : vector<16x384xf32>
      %c0_6 = arith.constant 0 : index
      %c0_7 = arith.constant 0 : index
      %13 = vector.load %arg2[%c0_6, %c0_7] : memref<384x128xf32, #tpu.memory_space<vmem>>, vector<384x128xf32>
      %cst_8 = arith.constant dense<0.000000e+00> : vector<16x128xf32>
      %14 = tpu.matmul %12, %13, %cst_8 {dimension_numbers = #tpu.dot_dimension_numbers<[1], [0], [0], [1], [0, 0, 1, 1], [], []>} : vector<16x384xf32>, vector<384x128xf32>, vector<16x128xf32> -> vector<16x128xf32>
      %cst_9 = arith.constant 1.000000e-30 : f32
      %15 = vector.broadcast %cst_9 : f32 to vector<16x128xf32>
      %16 = arith.maximumf %14, %15 : vector<16x128xf32>
      %17 = math.rsqrt %16 : vector<16x128xf32>
      %18 = arith.mulf %14, %17 : vector<16x128xf32>
      %cst_10 = arith.constant 1.000000e+00 : f32
      %19 = vector.broadcast %cst_10 : f32 to vector<16x128xf32>
      %20 = arith.subf %18, %19 : vector<16x128xf32>
      %21 = arith.mulf %20, %20 : vector<16x128xf32>
      %22 = vector.shape_cast %21 : vector<16x128xf32> to vector<1x16x128xf32>
      %cst_11 = arith.constant dense<0.000000e+00> : vector<1xf32>
      %23 = vector.multi_reduction <add>, %22, %cst_11 [1, 2] : vector<1x16x128xf32> to vector<1xf32>
      %24 = vector.shape_cast %23 : vector<1xf32> to vector<1x1x1xf32>
      %25 = vector.extract %24[0, 0, 0] : f32 from vector<1x1x1xf32>
      %26 = vector.broadcast %25 : f32 to vector<1x128xf32>
      %c0_12 = arith.constant 0 : index
      %c0_13 = arith.constant 0 : index
      %27 = vector.load %arg10[%c0_12, %c0_13] : memref<8x128xf32, #tpu.memory_space<vmem>>, vector<1x128xf32>
      tpu.vector_store %arg10[%c0_12, %c0_13], %26 {strides = array<i32>} : memref<8x128xf32, #tpu.memory_space<vmem>>, vector<1x128xf32>,
    } else {
    }
    %cst = arith.constant 0.000000e+00 : f32
    %6 = vector.broadcast %cst : f32 to vector<7x128xf32>
    %c1 = arith.constant 1 : index
    %c0 = arith.constant 0 : index
    %7 = vector.load %arg10[%c1, %c0] : memref<8x128xf32, #tpu.memory_space<vmem>>, vector<7x128xf32>
    tpu.vector_store %arg10[%c1, %c0], %6 {strides = array<i32>} : memref<8x128xf32, #tpu.memory_space<vmem>>, vector<7x128xf32>,
    %c0_i32_2 = arith.constant 0 : i32
    %8 = arith.cmpi eq, %arg0, %c0_i32_2 : i32
    %9 = arith.extui %8 : i1 to i32
    %c0_i32_3 = arith.constant 0 : i32
    %10 = arith.cmpi ne, %9, %c0_i32_3 : i32
    scf.if %10 {
      %c0_4 = arith.constant 0 : index
      %c0_5 = arith.constant 0 : index
      %11 = vector.load %arg3[%c0_4, %c0_5] : memref<8x128xf32, #tpu.memory_space<vmem>>, vector<8x128xf32>
      %c0_6 = arith.constant 0 : index
      %c0_7 = arith.constant 0 : index
      %12 = vector.load %arg4[%c0_6, %c0_7] : memref<8x128xf32, #tpu.memory_space<vmem>>, vector<8x128xf32>
      %13 = arith.subf %11, %12 : vector<8x128xf32>
      %c0_8 = arith.constant 0 : index
      %c0_9 = arith.constant 0 : index
      %14 = vector.load %arg5[%c0_8, %c0_9] : memref<8x128xf32, #tpu.memory_space<vmem>>, vector<8x128xf32>
      %15 = math.absf %13 : vector<8x128xf32>
      %16 = arith.mulf %15, %14 : vector<8x128xf32>
      %17 = vector.shape_cast %16 : vector<8x128xf32> to vector<1x8x128xf32>
      %cst_10 = arith.constant dense<0.000000e+00> : vector<1xf32>
      %18 = vector.multi_reduction <add>, %17, %cst_10 [1, 2] : vector<1x8x128xf32> to vector<1xf32>
      %19 = vector.shape_cast %18 : vector<1xf32> to vector<1x1x1xf32>
      %20 = vector.extract %19[0, 0, 0] : f32 from vector<1x1x1xf32>
      %21 = arith.mulf %13, %13 : vector<8x128xf32>
      %22 = arith.mulf %21, %14 : vector<8x128xf32>
      %23 = vector.shape_cast %22 : vector<8x128xf32> to vector<1x8x128xf32>
      %cst_11 = arith.constant dense<0.000000e+00> : vector<1xf32>
      %24 = vector.multi_reduction <add>, %23, %cst_11 [1, 2] : vector<1x8x128xf32> to vector<1xf32>
      %25 = vector.shape_cast %24 : vector<1xf32> to vector<1x1x1xf32>
      %26 = vector.extract %25[0, 0, 0] : f32 from vector<1x1x1xf32>
      %27 = vector.shape_cast %14 : vector<8x128xf32> to vector<1x8x128xf32>
      %cst_12 = arith.constant dense<0.000000e+00> : vector<1xf32>
      %28 = vector.multi_reduction <add>, %27, %cst_12 [1, 2] : vector<1x8x128xf32> to vector<1xf32>
      %29 = vector.shape_cast %28 : vector<1xf32> to vector<1x1x1xf32>
      %30 = vector.extract %29[0, 0, 0] : f32 from vector<1x1x1xf32>
      %c0_13 = arith.constant 0 : index
      %c0_14 = arith.constant 0 : index
      %31 = vector.load %arg6[%c0_13, %c0_14] : memref<8x128xf32, #tpu.memory_space<vmem>>, vector<8x128xf32>
      %cst_15 = arith.constant 1.000000e-03 : f32
      %cst_16 = arith.constant 9.990000e-01 : f32
      %32 = vector.broadcast %cst_15 : f32 to vector<8x128xf32>
      %33 = arith.maximumf %32, %31 : vector<8x128xf32>
      %34 = vector.broadcast %cst_16 : f32 to vector<8x128xf32>
      %35 = arith.minimumf %34, %33 : vector<8x128xf32>
      %c0_17 = arith.constant 0 : index
      %c0_18 = arith.constant 0 : index
      %36 = vector.load %arg7[%c0_17, %c0_18] : memref<8x128xf32, #tpu.memory_space<vmem>>, vector<8x128xf32>
      %37 = tpu.iota {dimensions = array<i32: 0>} : vector<8x128xi32>
      %c128_i32 = arith.constant 128 : i32
      %38 = vector.broadcast %c128_i32 : i32 to vector<8x128xi32>
      %39 = arith.muli %37, %38 : vector<8x128xi32>
      %40 = tpu.iota {dimensions = array<i32: 1>} : vector<8x128xi32>
      %41 = arith.addi %39, %40 : vector<8x128xi32>
      %c256_i32 = arith.constant 256 : i32
      %42 = vector.broadcast %c256_i32 : i32 to vector<8x128xi32>
      %43 = arith.cmpi slt, %41, %42 : vector<8x128xi32>
      %44 = arith.extui %43 : vector<8x128xi1> to vector<8x128xi32>
      %45 = arith.sitofp %44 : vector<8x128xi32> to vector<8x128xf32>
      %46 = math.log %35 : vector<8x128xf32>
      %47 = arith.mulf %36, %46 : vector<8x128xf32>
      %cst_19 = arith.constant 1.000000e+00 : f32
      %48 = vector.broadcast %cst_19 : f32 to vector<8x128xf32>
      %49 = arith.subf %48, %36 : vector<8x128xf32>
      %cst_20 = arith.constant 1.000000e+00 : f32
      %50 = vector.broadcast %cst_20 : f32 to vector<8x128xf32>
      %51 = arith.subf %50, %35 : vector<8x128xf32>
      %52 = math.log %51 : vector<8x128xf32>
      %53 = arith.mulf %49, %52 : vector<8x128xf32>
      %54 = arith.addf %47, %53 : vector<8x128xf32>
      %cst_21 = arith.constant 0.000000e+00 : f32
      %55 = vector.broadcast %cst_21 : f32 to vector<8x128xf32>
      %56 = arith.subf %55, %54 : vector<8x128xf32>
      %57 = arith.mulf %56, %45 : vector<8x128xf32>
      %58 = vector.shape_cast %57 : vector<8x128xf32> to vector<1x8x128xf32>
      %cst_22 = arith.constant dense<0.000000e+00> : vector<1xf32>
      %59 = vector.multi_reduction <add>, %58, %cst_22 [1, 2] : vector<1x8x128xf32> to vector<1xf32>
      %60 = vector.shape_cast %59 : vector<1xf32> to vector<1x1x1xf32>
      %61 = vector.extract %60[0, 0, 0] : f32 from vector<1x1x1xf32>
      %c0_23 = arith.constant 0 : index
      %c0_24 = arith.constant 0 : index
      %62 = vector.load %arg9[%c0_23, %c0_24] : memref<8x128xf32, #tpu.memory_space<vmem>>, vector<8x128xf32>
      %c0_25 = arith.constant 0 : index
      %c0_26 = arith.constant 0 : index
      %63 = vector.load %arg8[%c0_25, %c0_26] : memref<8x128xf32, #tpu.memory_space<vmem>>, vector<8x128xf32>
      %64 = math.absf %62 : vector<8x128xf32>
      %cst_27 = arith.constant 1.000000e-01 : f32
      %65 = vector.broadcast %cst_27 : f32 to vector<8x128xf32>
      %66 = arith.cmpf ole, %64, %65 : vector<8x128xf32>
      %67 = arith.extui %66 : vector<8x128xi1> to vector<8x128xi32>
      %68 = arith.sitofp %67 : vector<8x128xi32> to vector<8x128xf32>
      %69 = arith.subf %62, %63 : vector<8x128xf32>
      %70 = math.absf %69 : vector<8x128xf32>
      %71 = arith.mulf %70, %68 : vector<8x128xf32>
      %72 = vector.shape_cast %71 : vector<8x128xf32> to vector<1x8x128xf32>
      %cst_28 = arith.constant dense<0.000000e+00> : vector<1xf32>
      %73 = vector.multi_reduction <add>, %72, %cst_28 [1, 2] : vector<1x8x128xf32> to vector<1xf32>
      %74 = vector.shape_cast %73 : vector<1xf32> to vector<1x1x1xf32>
      %75 = vector.extract %74[0, 0, 0] : f32 from vector<1x1x1xf32>
      %76 = vector.shape_cast %68 : vector<8x128xf32> to vector<1x8x128xf32>
      %cst_29 = arith.constant dense<0.000000e+00> : vector<1xf32>
      %77 = vector.multi_reduction <add>, %76, %cst_29 [1, 2] : vector<1x8x128xf32> to vector<1xf32>
      %78 = vector.shape_cast %77 : vector<1xf32> to vector<1x1x1xf32>
      %79 = vector.extract %78[0, 0, 0] : f32 from vector<1x1x1xf32>
      %80 = vector.broadcast %20 : f32 to vector<1x128xf32>
      %c1_30 = arith.constant 1 : index
      %c0_31 = arith.constant 0 : index
      %81 = vector.load %arg10[%c1_30, %c0_31] : memref<8x128xf32, #tpu.memory_space<vmem>>, vector<1x128xf32>
      tpu.vector_store %arg10[%c1_30, %c0_31], %80 {strides = array<i32>} : memref<8x128xf32, #tpu.memory_space<vmem>>, vector<1x128xf32>,
      %82 = vector.broadcast %26 : f32 to vector<1x128xf32>
      %c2 = arith.constant 2 : index
      %c0_32 = arith.constant 0 : index
      %83 = vector.load %arg10[%c2, %c0_32] : memref<8x128xf32, #tpu.memory_space<vmem>>, vector<1x128xf32>
      tpu.vector_store %arg10[%c2, %c0_32], %82 {strides = array<i32>} : memref<8x128xf32, #tpu.memory_space<vmem>>, vector<1x128xf32>,
      %84 = vector.broadcast %30 : f32 to vector<1x128xf32>
      %c3 = arith.constant 3 : index
      %c0_33 = arith.constant 0 : index
      %85 = vector.load %arg10[%c3, %c0_33] : memref<8x128xf32, #tpu.memory_space<vmem>>, vector<1x128xf32>
      tpu.vector_store %arg10[%c3, %c0_33], %84 {strides = array<i32>} : memref<8x128xf32, #tpu.memory_space<vmem>>, vector<1x128xf32>,
      %86 = vector.broadcast %61 : f32 to vector<1x128xf32>
      %c4 = arith.constant 4 : index
      %c0_34 = arith.constant 0 : index
      %87 = vector.load %arg10[%c4, %c0_34] : memref<8x128xf32, #tpu.memory_space<vmem>>, vector<1x128xf32>
      tpu.vector_store %arg10[%c4, %c0_34], %86 {strides = array<i32>} : memref<8x128xf32, #tpu.memory_space<vmem>>, vector<1x128xf32>,
      %88 = vector.broadcast %75 : f32 to vector<1x128xf32>
      %c5 = arith.constant 5 : index
      %c0_35 = arith.constant 0 : index
      %89 = vector.load %arg10[%c5, %c0_35] : memref<8x128xf32, #tpu.memory_space<vmem>>, vector<1x128xf32>
      tpu.vector_store %arg10[%c5, %c0_35], %88 {strides = array<i32>} : memref<8x128xf32, #tpu.memory_space<vmem>>, vector<1x128xf32>,
      %90 = vector.broadcast %79 : f32 to vector<1x128xf32>
      %c6 = arith.constant 6 : index
      %c0_36 = arith.constant 0 : index
      %91 = vector.load %arg10[%c6, %c0_36] : memref<8x128xf32, #tpu.memory_space<vmem>>, vector<1x128xf32>
      tpu.vector_store %arg10[%c6, %c0_36], %90 {strides = array<i32>} : memref<8x128xf32, #tpu.memory_space<vmem>>, vector<1x128xf32>,
    } else {
    }
    return
  }
  func.func @transform_0(%arg0: i32) -> (i32, i32) {
    %c0_i32 = arith.constant 0 : i32
    %c0_i32_0 = arith.constant 0 : i32
    return %arg0, %c0_i32 : i32, i32
  }
  func.func @transform_1(%arg0: i32) -> (i32, i32) {
    %c0_i32 = arith.constant 0 : i32
    %c0_i32_0 = arith.constant 0 : i32
    %c0_i32_1 = arith.constant 0 : i32
    return %c0_i32, %c0_i32_0 : i32, i32
  }
  func.func @transform_2(%arg0: i32) -> (i32, i32) {
    %c0_i32 = arith.constant 0 : i32
    %c0_i32_0 = arith.constant 0 : i32
    %c0_i32_1 = arith.constant 0 : i32
    return %c0_i32, %c0_i32_0 : i32, i32
  }
  func.func @transform_3(%arg0: i32) -> (i32, i32) {
    %c0_i32 = arith.constant 0 : i32
    %c0_i32_0 = arith.constant 0 : i32
    %c0_i32_1 = arith.constant 0 : i32
    return %c0_i32, %c0_i32_0 : i32, i32
  }
  func.func @transform_4(%arg0: i32) -> (i32, i32) {
    %c0_i32 = arith.constant 0 : i32
    %c0_i32_0 = arith.constant 0 : i32
    %c0_i32_1 = arith.constant 0 : i32
    return %c0_i32, %c0_i32_0 : i32, i32
  }
  func.func @transform_5(%arg0: i32) -> (i32, i32) {
    %c0_i32 = arith.constant 0 : i32
    %c0_i32_0 = arith.constant 0 : i32
    %c0_i32_1 = arith.constant 0 : i32
    return %c0_i32, %c0_i32_0 : i32, i32
  }
  func.func @transform_6(%arg0: i32) -> (i32, i32) {
    %c0_i32 = arith.constant 0 : i32
    %c0_i32_0 = arith.constant 0 : i32
    %c0_i32_1 = arith.constant 0 : i32
    return %c0_i32, %c0_i32_0 : i32, i32
  }
  func.func @transform_7(%arg0: i32) -> (i32, i32) {
    %c0_i32 = arith.constant 0 : i32
    %c0_i32_0 = arith.constant 0 : i32
    %c0_i32_1 = arith.constant 0 : i32
    return %c0_i32, %c0_i32_0 : i32, i32
  }
  func.func @transform_8(%arg0: i32) -> (i32, i32) {
    %c0_i32 = arith.constant 0 : i32
    %c0_i32_0 = arith.constant 0 : i32
    %c0_i32_1 = arith.constant 0 : i32
    return %c0_i32, %c0_i32_0 : i32, i32
  }
  func.func @transform_9(%arg0: i32) -> (i32, i32) {
    %c0_i32 = arith.constant 0 : i32
    %c0_i32_0 = arith.constant 0 : i32
    return %arg0, %c0_i32 : i32, i32
  }
}

</mosaic_0001>

<bundles_post_ra>
// kernel: squeeze.11
= control target key start
LH: loop header
LB: loop body
LE: loop exit
PB: predicated region body
PF: predicated region fallthrough
CT: control target
= control target key end

     0   :  { %s43_s8 = smov 120   ;;  %vm8_vm0 = vcmask 64512   ;;  %s44_s11 = smov 96   ;;  %s79_s0 = inlined_call_operand.vmem [shape: f32[40], index: 0, kind: input, shape index: {}]   ;;  %s80_s1 = inlined_call_operand.vmem [shape: f32[5,8], index: 1, kind: output, shape index: {}]  }
   0x1   :  { %v5_v0 = vld [vmem:[%s79_s0] sm:$0x1]  ;;  %s42_s0 = smov 104   ;;  %s45_s12 = smov 112  }
   0x2   :  { %6 = vst [vmem:[#allocation0] sm:$0x1] %v5_v0 }
   0x9   :  { %v22_v1 = vld [vmem:[#allocation0] sm:$0x1]  }
   0xa   :  { %v10_v2 = vld [vmem:[#allocation0] sm:$0x1]   ;;  %23 = vrot.lane.b32.xlu1 %v22_v1, %s42_s0 }
   0xb   :  { %11 = vrot.lane.b32.xlu0 %v10_v2, %s43_s8  ;;  %v7_v3 = vld [vmem:[#allocation0] sm:$0x1]  }
   0xc   :  { %v28_v4 = vld [vmem:[#allocation0] sm:$0x1]   ;;  %9 = vst.msk [vmem:[%s80_s1] sm:$0x1] %vm8_vm0, %v7_v3  }
   0xd   :  { %v16_v5 = vld [vmem:[#allocation0] sm:$0x1]  }
   0xe   :  { %29 = vrot.lane.b32.xlu1 %v28_v4, %s44_s11 }
   0xf   :  { %17 = vrot.lane.b32.xlu0 %v16_v5, %s45_s12 }
  0x7c   :  { %v24_v6 = vpop.permute.xlu1 %23  }
  0x7d   :  { %v12_v7 = vpop.permute.xlu0 %11   ;;  %36 = vst.msk [vmem:[%s80_s1 + $0x3] sm:$0x1] %vm8_vm0, %v24_v6  }
  0x7e   :  { %34 = vst.msk [vmem:[%s80_s1 + $0x1] sm:$0x1] %vm8_vm0, %v12_v7  }
  0x80   :  { %v30_v8 = vpop.permute.xlu1 %29  }
  0x81   :  { %v18_v9 = vpop.permute.xlu0 %17   ;;  %37 = vst.msk [vmem:[%s80_s1 + $0x4] sm:$0x1] %vm8_vm0, %v30_v8  }
  0x82   :  { %35 = vst.msk [vmem:[%s80_s1 + $0x2] sm:$0x1] %vm8_vm0, %v18_v9  }

// kernel: trainer_compute_loss.1
= control target key start
LH: loop header
LB: loop body
LE: loop exit
PB: predicated region body
PF: predicated region fallthrough
CT: control target
= control target key end

     0   :  { %s1319_s30 = smov 0   ;;  %s1679_s0 = inlined_call_operand.vmem [shape: f32[72,384], index: 0, kind: input, shape index: {}]   ;;  %s1680_s1 = inlined_call_operand.vmem [shape: f32[384,128], index: 1, kind: input, shape index: {}]   ;;  %s1681_s2 = inlined_call_operand.vmem [shape: f32[8,128], index: 2, kind: input, shape index: {}]   ;;  %s1682_s3 = inlined_call_operand.vmem [shape: f32[8,128], index: 3, kind: input, shape index: {}]   ;;  %s1683_s4 = inlined_call_operand.vmem [shape: f32[8,128], index: 4, kind: input, shape index: {}]   ;;  %s1684_s5 = inlined_call_operand.vmem [shape: f32[8,128], index: 5, kind: input, shape index: {}]   ;;  %s1685_s6 = inlined_call_operand.vmem [shape: f32[8,128], index: 6, kind: input, shape index: {}]   ;;  %s1686_s7 = inlined_call_operand.vmem [shape: f32[8,128], index: 7, kind: input, shape index: {}]   ;;  %s1687_s8 = inlined_call_operand.vmem [shape: f32[8,128], index: 8, kind: input, shape index: {}]   ;;  %s1688_s9 = inlined_call_operand.vmem [shape: f32[40,128], index: 9, kind: output, shape index: {}]  }
   0x1 LB: > { %s1325_s10 = sadd.s32 4294967295, %s1265_s30   ;;  %p1022_p0 = scmp.ge.s32.totalorder %s1265_s30, 1  ;;  %s1265_s30 = sphi %s1319_s30, %s19_s30  }
   0x2   : > { %p299_p1 = scmp.lt.s32.totalorder %s1265_s30, 6 }
   0x4   : > { %p300_p2 = pnand %p1022_p0, %p299_p1 }
   0x5   : > { %s1023_s11 = sshll.u32 (!%p300_p2), %s1325_s10, 1  ;;  %p357_p3 = scmp.lt.s32.totalorder (!%p300_p2), %s1325_s10, 4 }
   0x6   : > { %303 = sbr.rel (%p300_p2) target bundleno = 1198 (0x4ae), region = 56  ;;  %p346_p4 = scmp.lt.s32.totalorder (!%p300_p2), %s1023_s11, 8 }
   0x7   : > { %p1026_p5 = scmp.ne.s32.totalorder (!%p300_p2), %s1325_s10, 4 }
   0xb   : > { %s358_s12 = scalar_select %p357_p3, %s1325_s10, 4 }
   0xc   : > { %s1690_s11 = smov (!%p346_p4, %s1023_s11), 8  ;;  %364 = sbr.rel (%p1026_p5) target bundleno = 480 (0x1e0), region = 60 }
   0xd   : > { %s1025_s13 = sshll.u32 %s358_s12, 3  ;;  %s1220_s14 = smul.u32 24, %s1690_s11 }
   0xe   : > { %s1335_s17 = scalar_lea.vmem %s1688_s9, %s1025_s13  ;;  %s1029_s13 = sshll.u32 (!%p1026_p5), %s1325_s10, 4 }
   0xf   : > { %s1340_s20 = scalar_lea.vmem %s1679_s0, %s1220_s14 }
  0x11   : > { %v408_v0 = vld [vmem:[%s1680_s1 + $0xf8] sm:$0xff]  ;;  %v407_v2 = vld [vmem:[%s1680_s1 + $0xf0] sm:$0xff]  ;;  %v406_v5 = vld [vmem:[%s1680_s1 + $0xe8] sm:$0xff] }
  0x12   : > { %v392_v1 = vld [vmem:[%s1680_s1 + $0x78] sm:$0xff]  ;;  %1038 = vmatprep.subr.mxu0 %v408_v0  ;;  %v391_v4 = vld [vmem:[%s1680_s1 + $0x70] sm:$0xff]  ;;  %v390_v7 = vld [vmem:[%s1680_s1 + $0x68] sm:$0xff] }
  0x13   : > { %v424_v3 = vld [vmem:[%s1680_s1 + $0x178] sm:$0xff]  ;;  %1039 = vmatpush3.msra.mxu0 %v392_v1  ;;  %v423_v6 = vld [vmem:[%s1680_s1 + $0x170] sm:$0xff]  ;;  %v422_v8 = vld [vmem:[%s1680_s1 + $0x168] sm:$0xff] }
  0x14   : > { %1150 = vmatprep.subr.mxu1 %v424_v3  ;;  %1040 = vmatprep.subr.mxu0 %v407_v2  ;;  %v405_v9 = vld [vmem:[%s1680_s1 + $0xe0] sm:$0xff]  ;;  %v404_v12 = vld [vmem:[%s1680_s1 + $0xd8] sm:$0xff]  ;;  %v403_v15 = vld [vmem:[%s1680_s1 + $0xd0] sm:$0xff] }
  0x15   : > { %1151 = vmatpush3.msra.mxu1 %v424_v3  ;;  %1041 = vmatpush3.msra.mxu0 %v391_v4  ;;  %v389_v10 = vld [vmem:[%s1680_s1 + $0x60] sm:$0xff]  ;;  %v388_v13 = vld [vmem:[%s1680_s1 + $0x58] sm:$0xff]  ;;  %v387_v16 = vld [vmem:[%s1680_s1 + $0x50] sm:$0xff] }
  0x16   : > { %1152 = vmatprep.subr.mxu1 %v423_v6  ;;  %1042 = vmatprep.subr.mxu0 %v406_v5  ;;  %v421_v11 = vld [vmem:[%s1680_s1 + $0x160] sm:$0xff]  ;;  %v420_v14 = vld [vmem:[%s1680_s1 + $0x158] sm:$0xff]  ;;  %v419_v17 = vld [vmem:[%s1680_s1 + $0x150] sm:$0xff] }
  0x17   : > { %1153 = vmatpush3.msra.mxu1 %v423_v6  ;;  %1043 = vmatpush3.msra.mxu0 %v390_v7  ;;  %v402_v18 = vld [vmem:[%s1680_s1 + $0xc8] sm:$0xff]  ;;  %v401_v21 = vld [vmem:[%s1680_s1 + $0xc0] sm:$0xff]  ;;  %v400_v24 = vld [vmem:[%s1680_s1 + $0xb8] sm:$0xff] }
  0x18   : > { %1154 = vmatprep.subr.mxu1 %v422_v8  ;;  %1044 = vmatprep.subr.mxu0 %v405_v9  ;;  %v386_v19 = vld [vmem:[%s1680_s1 + $0x48] sm:$0xff]  ;;  %v385_v22 = vld [vmem:[%s1680_s1 + $0x40] sm:$0xff]  ;;  %v384_v25 = vld [vmem:[%s1680_s1 + $0x38] sm:$0xff] }
  0x19   : > { %1155 = vmatpush3.msra.mxu1 %v422_v8  ;;  %1045 = vmatpush3.msra.mxu0 %v389_v10  ;;  %v418_v20 = vld [vmem:[%s1680_s1 + $0x148] sm:$0xff]  ;;  %v417_v23 = vld [vmem:[%s1680_s1 + $0x140] sm:$0xff]  ;;  %v416_v26 = vld [vmem:[%s1680_s1 + $0x138] sm:$0xff]  ;;  %v585_v8 = vlaneseq }
  0x1a   : > { %1156 = vmatprep.subr.mxu1 %v421_v11  ;;  %1046 = vmatprep.subr.mxu0 %v404_v12  ;;  %v399_v27 = vld [vmem:[%s1680_s1 + $0xb0] sm:$0xff]  ;;  %v398_v30 = vld [vmem:[%s1680_s1 + $0xa8] sm:$0xff]  ;;  %v397_v33 = vld [vmem:[%s1680_s1 + $0xa0] sm:$0xff] }
  0x1b   : > { %1157 = vmatpush3.msra.mxu1 %v421_v11  ;;  %1047 = vmatpush3.msra.mxu0 %v388_v13  ;;  %v383_v28 = vld [vmem:[%s1680_s1 + $0x30] sm:$0xff]  ;;  %v382_v31 = vld [vmem:[%s1680_s1 + $0x28] sm:$0xff]  ;;  %v381_v34 = vld [vmem:[%s1680_s1 + $0x20] sm:$0xff]  ;;  %v586_v9 = vshrl.u32 %v585_v8, 7  ;;  %v589_v13 = vstv %s1029_s13 }
  0x1c   : > { %1158 = vmatprep.subr.mxu1 %v420_v14  ;;  %1048 = vmatprep.subr.mxu0 %v403_v15  ;;  %v415_v29 = vld [vmem:[%s1680_s1 + $0x130] sm:$0xff]  ;;  %v414_v32 = vld [vmem:[%s1680_s1 + $0x128] sm:$0xff]  ;;  %v413_v35 = vld [vmem:[%s1680_s1 + $0x120] sm:$0xff] }
  0x1d   : > { %1159 = vmatpush3.msra.mxu1 %v420_v14  ;;  %1049 = vmatpush3.msra.mxu0 %v387_v16  ;;  %v396_v36 = vld [vmem:[%s1680_s1 + $0x98] sm:$0xff]  ;;  %v395_v39 = vld [vmem:[%s1680_s1 + $0x90] sm:$0xff]  ;;  %v366_v40 = vld [vmem:[%s1340_s20 + $0x8] sm:$0xff]  ;;  %v587_v11 = vadd.s32 8, %v586_v9  ;;  %v590_v16 = vadd.s32 %v589_v13, %v586_v9 }
  0x1e   : > { %1160 = vmatprep.subr.mxu1 %v419_v17  ;;  %1050 = vmatprep.subr.mxu0 %v402_v18  ;;  %v380_v37 = vld [vmem:[%s1680_s1 + $0x18] sm:$0xff]  ;;  %v379_v41 = vld [vmem:[%s1680_s1 + $0x10] sm:$0xff]  ;;  %v394_v43 = vld [vmem:[%s1680_s1 + $0x88] sm:$0xff]  ;;  %v372_v47 = vmul.f32 %v366_v40, %v366_v40 }
  0x1f   : > { %1161 = vmatpush3.msra.mxu1 %v419_v17  ;;  %1051 = vmatpush3.msra.mxu0 %v386_v19  ;;  %v412_v38 = vld [vmem:[%s1680_s1 + $0x118] sm:$0xff]  ;;  %v411_v42 = vld [vmem:[%s1680_s1 + $0x110] sm:$0xff]  ;;  %v365_v44 = vld [vmem:[%s1340_s20] sm:$0xff]  ;;  %v591_v17 = vadd.s32 %v589_v13, %v587_v11  ;;  %vm594_vm0 = vcmp.lt.s32.totalorder %v590_v16, 72 }
  0x20   : > { %1162 = vmatprep.subr.mxu1 %v418_v20  ;;  %1052 = vmatprep.subr.mxu0 %v401_v21  ;;  %v378_v45 = vld [vmem:[%s1680_s1 + $0x8] sm:$0xff]  ;;  %v367_v48 = vld [vmem:[%s1340_s20 + $0x10] sm:$0xff]  ;;  %v393_v49 = vld [vmem:[%s1680_s1 + $0x80] sm:$0xff]  ;;  %v371_v53 = vmul.f32 %v365_v44, %v365_v44 }
  0x21   : > { %1163 = vmatpush3.msra.mxu1 %v418_v20  ;;  %1053 = vmatpush3.msra.mxu0 %v385_v22  ;;  %v410_v46 = vld [vmem:[%s1680_s1 + $0x108] sm:$0xff]  ;;  %v369_v51 = vld [vmem:[%s1340_s20 + $0x20] sm:$0xff]  ;;  %v373_v55 = vmul.f32 %v367_v48, %v367_v48  ;;  %v368_v56 = vld [vmem:[%s1340_s20 + $0x18] sm:$0xff]  ;;  %vm595_vm1 = vcmp.lt.s32.totalorder %v591_v17, 72 }
  0x22   : > { %1164 = vmatprep.subr.mxu1 %v417_v23  ;;  %1054 = vmatprep.subr.mxu0 %v400_v24  ;;  %v370_v50 = vld [vmem:[%s1340_s20 + $0x28] sm:$0xff]  ;;  %v377_v52 = vld [vmem:[%s1680_s1] sm:$0xff]  ;;  %v375_v58 = vmul.f32 %v369_v51, %v369_v51  ;;  %v374_v59 = vmul.f32 %v368_v56, %v368_v56 }
  0x23   : > { %1165 = vmatpush3.msra.mxu1 %v417_v23  ;;  %1055 = vmatpush3.msra.mxu0 %v384_v25  ;;  %v409_v54 = vld [vmem:[%s1680_s1 + $0x100] sm:$0xff]  ;;  %v376_v57 = vmul.f32 %v370_v50, %v370_v50 }
  0x24   : > { %1166 = vmatprep.subr.mxu1 %v416_v26  ;;  %1056 = vmatprep.subr.mxu0 %v399_v27 }
  0x25   : > { %1167 = vmatpush3.msra.mxu1 %v416_v26  ;;  %1057 = vmatpush3.msra.mxu0 %v383_v28 }
  0x26   : > { %1168 = vmatprep.subr.mxu1 %v415_v29  ;;  %1058 = vmatprep.subr.mxu0 %v398_v30 }
  0x27   : > { %1169 = vmatpush3.msra.mxu1 %v415_v29  ;;  %1059 = vmatpush3.msra.mxu0 %v382_v31 }
  0x28   : > { %1170 = vmatprep.subr.mxu1 %v414_v32  ;;  %1060 = vmatprep.subr.mxu0 %v397_v33 }
  0x29   : > { %1171 = vmatpush3.msra.mxu1 %v414_v32  ;;  %1061 = vmatpush3.msra.mxu0 %v381_v34 }
  0x2a   : > { %1172 = vmatprep.subr.mxu1 %v413_v35  ;;  %1062 = vmatprep.subr.mxu0 %v396_v36 }
  0x2b   : > { %1173 = vmatpush3.msra.mxu1 %v413_v35  ;;  %1063 = vmatpush3.msra.mxu0 %v380_v37 }
  0x2c   : > { %1174 = vmatprep.subr.mxu1 %v412_v38  ;;  %1064 = vmatprep.subr.mxu0 %v395_v39 }
  0x2d   : > { %1175 = vmatpush3.msra.mxu1 %v412_v38  ;;  %1065 = vmatpush3.msra.mxu0 %v379_v41 }
  0x2e   : > { %1176 = vmatprep.subr.mxu1 %v411_v42  ;;  %1066 = vmatprep.subr.mxu0 %v394_v43 }
  0x2f   : > { %1177 = vmatpush3.msra.mxu1 %v411_v42  ;;  %1067 = vmatpush3.msra.mxu0 %v378_v45 }
  0x30   : > { %1178 = vmatprep.subr.mxu1 %v410_v46  ;;  %1068 = vmatprep.subr.mxu0 %v393_v49 }
  0x31   : > { %489 = vmatprep.mubr.f32.mxu0 %v372_v47  ;;  %1069 = vmatpush3.msra.mxu0 %v377_v52 }
  0x32   : > { %1179 = vmatpush3.msra.mxu1 %v410_v46  ;;  %490 = vmatmul.mubr.f32.vlgmr.msra.gmra.mxu0 %v371_v53 }
  0x33   : > { %1180 = vmatprep.subr.mxu1 %v409_v54  ;;  %1182 = vmatprep.mubr.f32.mxu1 %v373_v55 }
  0x34   : > { %1181 = vmatpush3.msra.mxu1 %v409_v54  ;;  %494 = vmatprep.mubr.f32.mxu0 %v375_v58 }
  0x35   : > { %1183 = vmatmul.mubr.f32.vlgmr.msra.gmra.mxu1 %v376_v57 }
  0x36   : > { %495 = vmatmul.mubr.f32.gmra.mxu0 %v374_v59 }
  0xf2   : > { %v1070_v60 = vpop.f32.mrf.mxu0 }
  0xf4   : > { %v1071_v61 = vpop.f32.mrf.mxu0 }
  0xf5   : > { %v1184_v62 = vpop.f32.mrf.mxu1  ;;  %v1072_v63 = vadd.f32 %v1071_v61, %v1070_v60 }
  0xf6   : > { %v1073_v0 = vpop.f32.mrf.mxu0 }
  0xf7   : > { %v566_v1 = vpop.f32.mrf.mxu1 }
  0xf8   : > { %v567_v2 = vadd.f32 %v1072_v63, %v566_v1  ;;  %v1074_v3 = vpop.f32.mrf.mxu0 }
  0xf9   : > { %v1075_v5 = vadd.f32 %v1074_v3, %v1073_v0 }
  0xfa   : > { %v575_v4 = vmax.f32 %v567_v2, 1e-30 }
  0xfb   : > { %v572_v6 = vadd.f32 %v1184_v62, %v1075_v5 }
  0xfc   : > { %1247 = vrsqrt.f32 %v575_v4 }
  0xfd   : > { %v576_v7 = vmax.f32 %v572_v6, 1e-30 }
  0xff   : > { %1249 = vrsqrt.f32 %v576_v7 }
 0x109   : > { %v1248_v10 = vpop.eup %1247 }
 0x10a   : > { %v579_v12 = vmul.f32 %v1248_v10, %v567_v2 }
 0x10c   : > { %v1027_v14 = vadd.f32 -1.0, %v579_v12  ;;  %v1250_v15 = vpop.eup %1249 }
 0x10d   : > { %v580_v18 = vmul.f32 %v1250_v15, %v572_v6 }
 0x10e   : > { %v583_v20 = vmul.f32 %v1027_v14, %v1027_v14 }
 0x10f   : > { %v1028_v19 = vadd.f32 -1.0, %v580_v18 }
 0x110   : > { %v603_v22 = vsel %vm594_vm0, %v583_v20, 0.0 }
 0x111   : > { %v584_v21 = vmul.f32 %v1028_v19, %v1028_v19 }
 0x113   : > { %v604_v23 = vsel %vm595_vm1, %v584_v21, 0.0 }
 0x114   : > { %v605_v24 = vadd.f32 %v604_v23, %v603_v22 }
 0x116   : > { %606 = vadd.xlane.f32.xlu0 %v605_v24 }
 0x19f   : > { %v607_v25 = vpop.xlane.xlu0 %606 }
 0x1a0   : > { %v608_v26 = vrot.slane %v607_v25, 4 }
 0x1a2   : > { %v609_v27 = vadd.f32 %v608_v26, %v607_v25 }
 0x1a4   : > { %v610_v28 = vrot.slane %v609_v27, 2 }
 0x1a6   : > { %v611_v29 = vadd.f32 %v610_v28, %v609_v27 }
 0x1a8   : > { %v612_v30 = vrot.slane %v611_v29, 1 }
 0x1aa   : > { %v613_v31 = vadd.f32 %v612_v30, %v611_v29 }
 0x1ac   : > { %1221 = vpush %v613_v31 }
 0x1dd   : > { %s1222_s14 = spop %1221 }
 0x1de   : > { %v615_v32 = vstv %s1222_s14 }
 0x1df   : > { %616 = vst [vmem:[%s1335_s17] sm:$0x1] %v615_v32 }
 0x1e0 PF: > { %p1030_p6 = scmp.eq.s32.totalorder %s1325_s10, 4 }
 0x1e2   : > { %620 = sbr.rel (%p1030_p6) target bundleno = 949 (0x3b5), region = 64 }
 0x1e7   : > { %v664_v33 = vld [vmem:[%s1680_s1 + $0xf8] sm:$0xff]  ;;  %v663_v35 = vld [vmem:[%s1680_s1 + $0xf0] sm:$0xff]  ;;  %v662_v38 = vld [vmem:[%s1680_s1 + $0xe8] sm:$0xff] }
 0x1e8   : > { %v648_v34 = vld [vmem:[%s1680_s1 + $0x78] sm:$0xff]  ;;  %1094 = vmatprep.subr.mxu0 %v664_v33  ;;  %v647_v37 = vld [vmem:[%s1680_s1 + $0x70] sm:$0xff]  ;;  %v646_v40 = vld [vmem:[%s1680_s1 + $0x68] sm:$0xff] }
 0x1e9   : > { %v680_v36 = vld [vmem:[%s1680_s1 + $0x178] sm:$0xff]  ;;  %1095 = vmatpush3.msra.mxu0 %v648_v34  ;;  %v679_v39 = vld [vmem:[%s1680_s1 + $0x170] sm:$0xff]  ;;  %v678_v41 = vld [vmem:[%s1680_s1 + $0x168] sm:$0xff] }
 0x1ea   : > { %1185 = vmatprep.subr.mxu1 %v680_v36  ;;  %1096 = vmatprep.subr.mxu0 %v663_v35  ;;  %v661_v42 = vld [vmem:[%s1680_s1 + $0xe0] sm:$0xff]  ;;  %v660_v45 = vld [vmem:[%s1680_s1 + $0xd8] sm:$0xff]  ;;  %v659_v48 = vld [vmem:[%s1680_s1 + $0xd0] sm:$0xff] }
 0x1eb   : > { %1186 = vmatpush3.msra.mxu1 %v680_v36  ;;  %1097 = vmatpush3.msra.mxu0 %v647_v37  ;;  %v645_v43 = vld [vmem:[%s1680_s1 + $0x60] sm:$0xff]  ;;  %v644_v46 = vld [vmem:[%s1680_s1 + $0x58] sm:$0xff]  ;;  %v643_v49 = vld [vmem:[%s1680_s1 + $0x50] sm:$0xff] }
 0x1ec   : > { %1187 = vmatprep.subr.mxu1 %v679_v39  ;;  %1098 = vmatprep.subr.mxu0 %v662_v38  ;;  %v677_v44 = vld [vmem:[%s1680_s1 + $0x160] sm:$0xff]  ;;  %v676_v47 = vld [vmem:[%s1680_s1 + $0x158] sm:$0xff]  ;;  %v675_v50 = vld [vmem:[%s1680_s1 + $0x150] sm:$0xff] }
 0x1ed   : > { %1188 = vmatpush3.msra.mxu1 %v679_v39  ;;  %1099 = vmatpush3.msra.mxu0 %v646_v40  ;;  %v658_v51 = vld [vmem:[%s1680_s1 + $0xc8] sm:$0xff]  ;;  %v657_v54 = vld [vmem:[%s1680_s1 + $0xc0] sm:$0xff]  ;;  %v656_v57 = vld [vmem:[%s1680_s1 + $0xb8] sm:$0xff] }
 0x1ee   : > { %1189 = vmatprep.subr.mxu1 %v678_v41  ;;  %1100 = vmatprep.subr.mxu0 %v661_v42  ;;  %v642_v52 = vld [vmem:[%s1680_s1 + $0x48] sm:$0xff]  ;;  %v641_v55 = vld [vmem:[%s1680_s1 + $0x40] sm:$0xff]  ;;  %v640_v58 = vld [vmem:[%s1680_s1 + $0x38] sm:$0xff] }
 0x1ef   : > { %1190 = vmatpush3.msra.mxu1 %v678_v41  ;;  %1101 = vmatpush3.msra.mxu0 %v645_v43  ;;  %v674_v53 = vld [vmem:[%s1680_s1 + $0x148] sm:$0xff]  ;;  %v673_v56 = vld [vmem:[%s1680_s1 + $0x140] sm:$0xff]  ;;  %v672_v59 = vld [vmem:[%s1680_s1 + $0x138] sm:$0xff] }
 0x1f0   : > { %1191 = vmatprep.subr.mxu1 %v677_v44  ;;  %1102 = vmatprep.subr.mxu0 %v660_v45  ;;  %v655_v60 = vld [vmem:[%s1680_s1 + $0xb0] sm:$0xff]  ;;  %v654_v63 = vld [vmem:[%s1680_s1 + $0xa8] sm:$0xff]  ;;  %v653_v2 = vld [vmem:[%s1680_s1 + $0xa0] sm:$0xff] }
 0x1f1   : > { %1192 = vmatpush3.msra.mxu1 %v677_v44  ;;  %1103 = vmatpush3.msra.mxu0 %v644_v46  ;;  %v639_v61 = vld [vmem:[%s1680_s1 + $0x30] sm:$0xff]  ;;  %v638_v0 = vld [vmem:[%s1680_s1 + $0x28] sm:$0xff]  ;;  %v637_v3 = vld [vmem:[%s1680_s1 + $0x20] sm:$0xff] }
 0x1f2   : > { %1193 = vmatprep.subr.mxu1 %v676_v47  ;;  %1104 = vmatprep.subr.mxu0 %v659_v48  ;;  %v671_v62 = vld [vmem:[%s1680_s1 + $0x130] sm:$0xff]  ;;  %v670_v1 = vld [vmem:[%s1680_s1 + $0x128] sm:$0xff]  ;;  %v669_v4 = vld [vmem:[%s1680_s1 + $0x120] sm:$0xff] }
 0x1f3   : > { %1194 = vmatpush3.msra.mxu1 %v676_v47  ;;  %1105 = vmatpush3.msra.mxu0 %v643_v49  ;;  %v652_v5 = vld [vmem:[%s1680_s1 + $0x98] sm:$0xff]  ;;  %v651_v8 = vld [vmem:[%s1680_s1 + $0x90] sm:$0xff]  ;;  %v622_v9 = vld [vmem:[%s1340_s20 + $0x8] sm:$0xff] }
 0x1f4   : > { %1195 = vmatprep.subr.mxu1 %v675_v50  ;;  %1106 = vmatprep.subr.mxu0 %v658_v51  ;;  %v636_v6 = vld [vmem:[%s1680_s1 + $0x18] sm:$0xff]  ;;  %v635_v10 = vld [vmem:[%s1680_s1 + $0x10] sm:$0xff]  ;;  %v650_v12 = vld [vmem:[%s1680_s1 + $0x88] sm:$0xff]  ;;  %v628_v16 = vmul.f32 %v622_v9, %v622_v9 }
 0x1f5   : > { %1196 = vmatpush3.msra.mxu1 %v675_v50  ;;  %1107 = vmatpush3.msra.mxu0 %v642_v52  ;;  %v668_v7 = vld [vmem:[%s1680_s1 + $0x118] sm:$0xff]  ;;  %v667_v11 = vld [vmem:[%s1680_s1 + $0x110] sm:$0xff]  ;;  %v621_v13 = vld [vmem:[%s1340_s20] sm:$0xff] }
 0x1f6   : > { %1197 = vmatprep.subr.mxu1 %v674_v53  ;;  %1108 = vmatprep.subr.mxu0 %v657_v54  ;;  %v634_v14 = vld [vmem:[%s1680_s1 + $0x8] sm:$0xff]  ;;  %v623_v17 = vld [vmem:[%s1340_s20 + $0x10] sm:$0xff]  ;;  %v649_v18 = vld [vmem:[%s1680_s1 + $0x80] sm:$0xff]  ;;  %v627_v22 = vmul.f32 %v621_v13, %v621_v13 }
 0x1f7   : > { %1198 = vmatpush3.msra.mxu1 %v674_v53  ;;  %1109 = vmatpush3.msra.mxu0 %v641_v55  ;;  %v666_v15 = vld [vmem:[%s1680_s1 + $0x108] sm:$0xff]  ;;  %v625_v20 = vld [vmem:[%s1340_s20 + $0x20] sm:$0xff]  ;;  %v629_v24 = vmul.f32 %v623_v17, %v623_v17  ;;  %v624_v25 = vld [vmem:[%s1340_s20 + $0x18] sm:$0xff] }
 0x1f8   : > { %1199 = vmatprep.subr.mxu1 %v673_v56  ;;  %1110 = vmatprep.subr.mxu0 %v656_v57  ;;  %v626_v19 = vld [vmem:[%s1340_s20 + $0x28] sm:$0xff]  ;;  %v633_v21 = vld [vmem:[%s1680_s1] sm:$0xff]  ;;  %v631_v27 = vmul.f32 %v625_v20, %v625_v20  ;;  %v630_v28 = vmul.f32 %v624_v25, %v624_v25 }
 0x1f9   : > { %1200 = vmatpush3.msra.mxu1 %v673_v56  ;;  %1111 = vmatpush3.msra.mxu0 %v640_v58  ;;  %v665_v23 = vld [vmem:[%s1680_s1 + $0x100] sm:$0xff]  ;;  %v632_v26 = vmul.f32 %v626_v19, %v626_v19 }
 0x1fa   : > { %1201 = vmatprep.subr.mxu1 %v672_v59  ;;  %1112 = vmatprep.subr.mxu0 %v655_v60 }
 0x1fb   : > { %1202 = vmatpush3.msra.mxu1 %v672_v59  ;;  %1113 = vmatpush3.msra.mxu0 %v639_v61 }
 0x1fc   : > { %1203 = vmatprep.subr.mxu1 %v671_v62  ;;  %1114 = vmatprep.subr.mxu0 %v654_v63 }
 0x1fd   : > { %1204 = vmatpush3.msra.mxu1 %v671_v62  ;;  %1115 = vmatpush3.msra.mxu0 %v638_v0 }
 0x1fe   : > { %1205 = vmatprep.subr.mxu1 %v670_v1  ;;  %1116 = vmatprep.subr.mxu0 %v653_v2 }
 0x1ff   : > { %1206 = vmatpush3.msra.mxu1 %v670_v1  ;;  %1117 = vmatpush3.msra.mxu0 %v637_v3 }
 0x200   : > { %1207 = vmatprep.subr.mxu1 %v669_v4  ;;  %1118 = vmatprep.subr.mxu0 %v652_v5 }
 0x201   : > { %1208 = vmatpush3.msra.mxu1 %v669_v4  ;;  %1119 = vmatpush3.msra.mxu0 %v636_v6 }
 0x202   : > { %1209 = vmatprep.subr.mxu1 %v668_v7  ;;  %1120 = vmatprep.subr.mxu0 %v651_v8 }
 0x203   : > { %1210 = vmatpush3.msra.mxu1 %v668_v7  ;;  %1121 = vmatpush3.msra.mxu0 %v635_v10 }
 0x204   : > { %1211 = vmatprep.subr.mxu1 %v667_v11  ;;  %1122 = vmatprep.subr.mxu0 %v650_v12 }
 0x205   : > { %1212 = vmatpush3.msra.mxu1 %v667_v11  ;;  %1123 = vmatpush3.msra.mxu0 %v634_v14 }
 0x206   : > { %1213 = vmatprep.subr.mxu1 %v666_v15  ;;  %1124 = vmatprep.subr.mxu0 %v649_v18 }
 0x207   : > { %745 = vmatprep.mubr.f32.mxu0 %v628_v16  ;;  %1125 = vmatpush3.msra.mxu0 %v633_v21 }
 0x208   : > { %1214 = vmatpush3.msra.mxu1 %v666_v15  ;;  %746 = vmatmul.mubr.f32.vlgmr.msra.gmra.mxu0 %v627_v22 }
 0x209   : > { %1215 = vmatprep.subr.mxu1 %v665_v23  ;;  %1217 = vmatprep.mubr.f32.mxu1 %v629_v24 }
 0x20a   : > { %1216 = vmatpush3.msra.mxu1 %v665_v23  ;;  %750 = vmatprep.mubr.f32.mxu0 %v631_v27 }
 0x20b   : > { %1218 = vmatmul.mubr.f32.vlgmr.msra.gmra.mxu1 %v632_v26 }
 0x20c   : > { %751 = vmatmul.mubr.f32.gmra.mxu0 %v630_v28 }
 0x2c8   : > { %v1126_v29 = vpop.f32.mrf.mxu0 }
 0x2ca   : > { %v1127_v30 = vpop.f32.mrf.mxu0 }
 0x2cb   : > { %v1219_v31 = vpop.f32.mrf.mxu1  ;;  %v1128_v32 = vadd.f32 %v1127_v30, %v1126_v29 }
 0x2cc   : > { %v1129_v33 = vpop.f32.mrf.mxu0 }
 0x2cd   : > { %v822_v34 = vpop.f32.mrf.mxu1 }
 0x2ce   : > { %v823_v35 = vadd.f32 %v1128_v32, %v822_v34  ;;  %v1130_v36 = vpop.f32.mrf.mxu0 }
 0x2cf   : > { %v1131_v38 = vadd.f32 %v1130_v36, %v1129_v33 }
 0x2d0   : > { %v831_v37 = vmax.f32 %v823_v35, 1e-30 }
 0x2d1   : > { %v828_v39 = vadd.f32 %v1219_v31, %v1131_v38 }
 0x2d2   : > { %1251 = vrsqrt.f32 %v831_v37 }
 0x2d3   : > { %v832_v40 = vmax.f32 %v828_v39, 1e-30 }
 0x2d5   : > { %1253 = vrsqrt.f32 %v832_v40 }
 0x2df   : > { %v1252_v41 = vpop.eup %1251 }
 0x2e0   : > { %v835_v42 = vmul.f32 %v1252_v41, %v823_v35 }
 0x2e2   : > { %v1254_v43 = vpop.eup %1253  ;;  %v1031_v45 = vadd.f32 -1.0, %v835_v42 }
 0x2e3   : > { %v836_v44 = vmul.f32 %v1254_v43, %v828_v39 }
 0x2e4   : > { %v839_v47 = vmul.f32 %v1031_v45, %v1031_v45 }
 0x2e5   : > { %v1032_v46 = vadd.f32 -1.0, %v836_v44 }
 0x2e7   : > { %v840_v48 = vmul.f32 %v1032_v46, %v1032_v46 }
 0x2e9   : > { %v841_v49 = vadd.f32 %v840_v48, %v839_v47 }
 0x2eb   : > { %842 = vadd.xlane.f32.xlu0 %v841_v49 }
 0x374   : > { %v843_v50 = vpop.xlane.xlu0 %842 }
 0x375   : > { %v844_v51 = vrot.slane %v843_v50, 4 }
 0x377   : > { %v845_v52 = vadd.f32 %v844_v51, %v843_v50 }
 0x379   : > { %v846_v53 = vrot.slane %v845_v52, 2 }
 0x37b   : > { %v847_v54 = vadd.f32 %v846_v53, %v845_v52 }
 0x37d   : > { %v848_v55 = vrot.slane %v847_v54, 1 }
 0x37f   : > { %v849_v56 = vadd.f32 %v848_v55, %v847_v54 }
 0x381   : > { %1223 = vpush %v849_v56 }
 0x3b2   : > { %s1224_s20 = spop %1223 }
 0x3b3   : > { %v851_v57 = vstv %s1224_s20 }
 0x3b4   : > { %852 = vst [vmem:[%s1335_s17] sm:$0x1] %v851_v57 }
 0x3b5 PF: > { %v1267_v58 = vmov 0.0   ;;  %p1033_p7 = scmp.ne.s32.totalorder %s1325_s10, 0 }
 0x3b6   : > { %853 = vst [vmem:[%s1335_s17 + $0x1] sm:$0x7f] %v1267_v58 }
 0x3b7   : > { %857 = sbr.rel (%p1033_p7) target bundleno = 1198 (0x4ae), region = 68 }
 0x3bc   : > { %v858_v59 = vld [vmem:[%s1681_s2] sm:$0xff]  ;;  %v1268_v12 = vmov 0.0   ;;  %v897_v14 = vlaneseq }
 0x3bd   : > { %v859_v60 = vld [vmem:[%s1682_s3] sm:$0xff] }
 0x3be   : > { %v861_v61 = vld [vmem:[%s1683_s4] sm:$0xff]  ;;  %v860_v62 = vsub.f32 %v858_v59, %v859_v60  ;;  %v898_v16 = vshrl.u32 %v897_v14, 7  ;;  %v901_v18 = vand.u32 127, %v897_v14 }
 0x3bf   : > { %884 = vadd.xlane.f32.xlu1 %v861_v61  ;;  %v926_v63 = vld [vmem:[%s1687_s8] sm:$0xff] }
 0x3c0   : > { %v927_v0 = vld [vmem:[%s1686_s7] sm:$0xff]  ;;  %v928_v2 = vand.u32 2147483647, %v926_v63  ;;  %v862_v4 = vand.u32 2147483647, %v860_v62  ;;  %v873_v5 = vmul.f32 %v860_v62, %v860_v62  ;;  %v899_v17 = vmul.u32 128, %v898_v16 }
 0x3c1   : > { %v893_v1 = vld [vmem:[%s1684_s5] sm:$0xff]  ;;  %v932_v6 = vsub.f32 %v926_v63, %v927_v0 }
 0x3c2   : > { %v894_v3 = vmax.f32 %v893_v1, 0.001  ;;  %v863_v8 = vmul.f32 %v862_v4, %v861_v61  ;;  %vm929_vm2 = vcmp.le.f32.partialorder %v928_v2, 0.1  ;;  %v874_v10 = vmul.f32 %v873_v5, %v861_v61  ;;  %v896_v19 = vld [vmem:[%s1685_s6] sm:$0xff] }
 0x3c3   : > { %v933_v11 = vand.u32 2147483647, %v932_v6  ;;  %v1035_v13 = vsel %vm929_vm2, 1.0, %v1268_v12  ;;  %v902_v21 = vadd.s32 %v901_v18, %v899_v17  ;;  %v909_v23 = vsub.f32 1.0, %v896_v19 }
 0x3c4   : > { %v895_v7 = vmin.f32 %v894_v3, 0.999  ;;  %864 = vadd.xlane.f32.xlu0 %v863_v8 }
 0x3c5   : > { %v934_v15 = vmul.f32 %v1035_v13, %v933_v11  ;;  %vm903_vm3 = vcmp.lt.s32.totalorder %v902_v21, 256 }
 0x3c6   : > { %1255 = vlog2.f32 %v895_v7  ;;  %v910_v9 = vsub.f32 1.0, %v895_v7  ;;  %v1034_v29 = vsel %vm903_vm3, 1.0, %v1268_v12 }
 0x3c8   : > { %1257 = vlog2.f32 %v910_v9  ;;  %875 = vadd.xlane.f32.xlu0 %v874_v10 }
 0x3cc   : > { %935 = vadd.xlane.f32.xlu0 %v934_v15 }
 0x3d3   : > { %v1256_v20 = vpop.eup %1255 }
 0x3d4   : > { %v907_v22 = vmul.f32 0.6931472, %v1256_v20 }
 0x3d5   : > { %v1258_v24 = vpop.eup %1257 }
 0x3d6   : > { %v908_v25 = vmul.f32 %v907_v22, %v896_v19  ;;  %v912_v26 = vmul.f32 0.6931472, %v1258_v24 }
 0x3d8   : > { %v913_v27 = vmul.f32 %v912_v26, %v909_v23 }
 0x3da   : > { %v914_v28 = vadd.f32 %v913_v27, %v908_v25 }
 0x3dc   : > { %v915_v30 = vsub.f32 0.0, %v914_v28 }
 0x3de   : > { %v916_v31 = vmul.f32 %v1034_v29, %v915_v30 }
 0x3e0   : > { %917 = vadd.xlane.f32.xlu1 %v916_v31 }
 0x3e4   : > { %944 = vadd.xlane.f32.xlu1 %v1035_v13 }
 0x448   : > { %v885_v32 = vpop.xlane.xlu1 %884 }
 0x449   : > { %v886_v33 = vrot.slane %v885_v32, 4 }
 0x44b   : > { %v887_v34 = vadd.f32 %v886_v33, %v885_v32 }
 0x44d   : > { %v865_v35 = vpop.xlane.xlu0 %864  ;;  %v888_v37 = vrot.slane %v887_v34, 2 }
 0x44e   : > { %v866_v36 = vrot.slane %v865_v35, 4 }
 0x44f   : > { %v889_v42 = vadd.f32 %v888_v37, %v887_v34 }
 0x450   : > { %v867_v38 = vadd.f32 %v866_v36, %v865_v35 }
 0x451   : > { %v876_v39 = vpop.xlane.xlu0 %875  ;;  %v890_v47 = vrot.slane %v889_v42, 1 }
 0x452   : > { %v868_v40 = vrot.slane %v867_v38, 2  ;;  %v877_v41 = vrot.slane %v876_v39, 4 }
 0x453   : > { %v891_v52 = vadd.f32 %v890_v47, %v889_v42 }
 0x454   : > { %v878_v43 = vadd.f32 %v877_v41, %v876_v39  ;;  %v869_v44 = vadd.f32 %v868_v40, %v867_v38 }
 0x455   : > { %v936_v51 = vpop.xlane.xlu0 %935 }
 0x456   : > { %v879_v45 = vrot.slane %v878_v43, 2  ;;  %v870_v46 = vrot.slane %v869_v44, 1  ;;  %v937_v54 = vrot.slane %v936_v51, 4 }
 0x458   : > { %v871_v48 = vadd.f32 %v870_v46, %v869_v44  ;;  %v880_v49 = vadd.f32 %v879_v45, %v878_v43  ;;  %v938_v55 = vadd.f32 %v937_v54, %v936_v51 }
 0x45a   : > { %1225 = vpush %v871_v48  ;;  %v881_v50 = vrot.slane %v880_v49, 1  ;;  %v939_v56 = vrot.slane %v938_v55, 2 }
 0x45c   : > { %v882_v53 = vadd.f32 %v881_v50, %v880_v49  ;;  %v940_v60 = vadd.f32 %v939_v56, %v938_v55 }
 0x45e   : > { %1227 = vpush %v882_v53  ;;  %v941_v2 = vrot.slane %v940_v60, 1 }
 0x45f   : > { %1229 = vpush %v891_v52 }
 0x460   : > { %v942_v7 = vadd.f32 %v941_v2, %v940_v60 }
 0x469   : > { %v918_v57 = vpop.xlane.xlu1 %917 }
 0x46a   : > { %v919_v58 = vrot.slane %v918_v57, 4 }
 0x46c   : > { %v920_v59 = vadd.f32 %v919_v58, %v918_v57 }
 0x46d   : > { %v945_v61 = vpop.xlane.xlu1 %944 }
 0x46e   : > { %v921_v62 = vrot.slane %v920_v59, 2  ;;  %v946_v63 = vrot.slane %v945_v61, 4 }
 0x470   : > { %v947_v0 = vadd.f32 %v946_v63, %v945_v61  ;;  %v922_v1 = vadd.f32 %v921_v62, %v920_v59 }
 0x472   : > { %v948_v3 = vrot.slane %v947_v0, 2  ;;  %v923_v4 = vrot.slane %v922_v1, 1 }
 0x474   : > { %v949_v5 = vadd.f32 %v948_v3, %v947_v0  ;;  %v924_v6 = vadd.f32 %v923_v4, %v922_v1 }
 0x476   : > { %1231 = vpush %v924_v6  ;;  %v950_v8 = vrot.slane %v949_v5, 1 }
 0x477   : > { %1233 = vpush %v942_v7 }
 0x478   : > { %v951_v9 = vadd.f32 %v950_v8, %v949_v5 }
 0x47a   : > { %1235 = vpush %v951_v9 }
 0x48b   : > { %s1226_s24 = spop %1225 }
 0x48c   : > { %v953_v10 = vstv %s1226_s24 }
 0x48d   : > { %954 = vst [vmem:[%s1335_s17 + $0x1] sm:$0x1] %v953_v10 }
 0x48f   : > { %s1228_s25 = spop %1227 }
 0x490   : > { %v955_v11 = vstv %s1228_s25  ;;  %s1230_s26 = spop %1229 }
 0x491   : > { %956 = vst [vmem:[%s1335_s17 + $0x2] sm:$0x1] %v955_v11  ;;  %v957_v12 = vstv %s1230_s26 }
 0x492   : > { %958 = vst [vmem:[%s1335_s17 + $0x3] sm:$0x1] %v957_v12 }
 0x4a7   : > { %s1232_s27 = spop %1231 }
 0x4a8   : > { %v959_v13 = vstv %s1232_s27  ;;  %s1234_s20 = spop %1233 }
 0x4a9   : > { %960 = vst [vmem:[%s1335_s17 + $0x4] sm:$0x1] %v959_v13  ;;  %v961_v14 = vstv %s1234_s20 }
 0x4aa   : > { %962 = vst [vmem:[%s1335_s17 + $0x5] sm:$0x1] %v961_v14 }
 0x4ab   : > { %s1236_s28 = spop %1235 }
 0x4ac   : > { %v963_v15 = vstv %s1236_s28 }
 0x4ad   : > { %964 = vst [vmem:[%s1335_s17 + $0x6] sm:$0x1] %v963_v15 }
 0x4ae PF: > { %s19_s30 = sadd.s32 1, %s1265_s30  }
 0x4af   : > { %p16_p8 = scmp.ge.s32.totalorder %s19_s30, 7  }
 0x4b1   :  { %18 = sbr.rel (!%p16_p8) target bundleno = 1 (0x1), region = 98 }

</bundles_post_ra>
